<compile_context>
chip_gen: v5e
topology: v5e:2x2
jax: 0.10.0
libtpu: 0.0.40
codegen_flags: <defaults>
</compile_context>

<pallas_src>
import functools
import math

import jax
import jax.numpy as jnp
from jax.experimental import pallas as pl
from jax.experimental.pallas import tpu as pltpu


def _round_up(x, m):
    return ((x + m - 1) // m) * m


# ---------------- fused Pallas kernel ----------------
def _mfc_kernel(x_ref, w_ref, shift_ref, *rest, has_bn, k_tiled):
    """Fused tile: (partial) matmul on the MXU + affine epilogue.

    shift_ref is the bias (no BN) or the folded  b*scale + beta - mean*scale
    (BN).  scale_ref is present iff has_bn.
    """
    if has_bn:
        scale_ref, *rest = rest
    if k_tiled:
        o_ref, acc_ref = rest
    else:
        (o_ref,) = rest

    # Native-dtype operands straight into the MXU; accumulate in f32.
    part = jnp.dot(x_ref[...], w_ref[...], preferred_element_type=jnp.float32)

    def _epilogue(y):
        if has_bn:
            y = y * scale_ref[...] + shift_ref[...]   # folded eval-mode BN (bias inside shift)
        else:
            y = y + shift_ref[...]                    # plain bias
        # Dropout is identity at inference time.
        o_ref[...] = y.astype(o_ref.dtype)

    if not k_tiled:
        _epilogue(part)
        return

    k = pl.program_id(1)

    @pl.when(k == 0)
    def _():
        acc_ref[...] = part

    @pl.when(k != 0)
    def _():
        acc_ref[...] += part

    @pl.when(k == pl.num_programs(1) - 1)
    def _():
        _epilogue(acc_ref[...])


# ---------------- tiling heuristics ----------------
_VMEM_BUDGET = 28 * 1024 * 1024  # stay under the 32 MiB default scoped VMEM (v7x-safe)


def _pick_tiles(M, K, N_pad, itemsize):
    # K tile: largest of (512, 256, 128) that exactly divides K, else K untiled.
    # (The contraction axis must never read block padding.)
    tk = next((c for c in (512, 256, 128) if K % c == 0), K)

    def vmem_need(tm):
        # double-buffered x / w / out tiles + f32 accumulator + per-feature vectors
        return ((2 * tm * tk + 2 * tk * N_pad + 2 * tm * N_pad) * itemsize
                + tm * N_pad * 4 + 4 * N_pad * 4)

    if M < 256:
        return M, tk  # whole (small) batch in a single full-dim row block

    # >= 2 row blocks so the "parallel" grid axis spans both v7x TensorCores.
    half = _round_up(pl.cdiv(M, 2), 8)
    for tm in (512, 256, 128, 64, 32, 16, 8):
        tm = min(tm, half)
        if vmem_need(tm) <= _VMEM_BUDGET:
            return tm, tk
    return 8, tk


# ---------------- wrapper ----------------
def pallas_mfc(x, w, b, bn_scale=None, bn_shift=None):
    """y = x @ w + b, optionally followed by a per-feature affine (folded eval BN)."""
    M, K = x.shape
    N = w.shape[1]
    has_bn = bn_scale is not None

    # Lane-dense output: pad the feature axis to a multiple of 128.
    N_pad = max(_round_up(N, 128), 128)

    # Fold the bias into the BN shift so the epilogue is a single FMA.
    if has_bn:
        shift = (b * bn_scale + bn_shift).astype(jnp.float32)
        scale = bn_scale.astype(jnp.float32)
    else:
        shift = b.astype(jnp.float32)
        scale = None

    if N_pad != N:
        w = jnp.pad(w, ((0, 0), (0, N_pad - N)))
        shift = jnp.pad(shift, (0, N_pad - N))
        if has_bn:
            scale = jnp.pad(scale, (0, N_pad - N))

    itemsize = max(x.dtype.itemsize, w.dtype.itemsize)
    tm, tk = _pick_tiles(M, K, N_pad, itemsize)
    nm = pl.cdiv(M, tm)
    nk = K // tk
    k_tiled = nk > 1

    args = [x, w, shift.reshape(1, N_pad)]
    if k_tiled:
        in_specs = [
            pl.BlockSpec((tm, tk), lambda i, k: (i, k)),       # activations
            pl.BlockSpec((tk, N_pad), lambda i, k: (k, 0)),    # weight K-slab
            pl.BlockSpec((1, N_pad), lambda i, k: (0, 0)),     # bias / folded shift
        ]
        if has_bn:
            in_specs.append(pl.BlockSpec((1, N_pad), lambda i, k: (0, 0)))
            args.append(scale.reshape(1, N_pad))
        out_specs = pl.BlockSpec((tm, N_pad), lambda i, k: (i, 0))
        grid = (nm, nk)
        scratch = [pltpu.VMEM((tm, N_pad), jnp.float32)]
        dims = ("parallel", "arbitrary")
    else:
        in_specs = [
            pl.BlockSpec((tm, K), lambda i: (i, 0)),
            pl.BlockSpec((K, N_pad), lambda i: (0, 0)),
            pl.BlockSpec((1, N_pad), lambda i: (0, 0)),
        ]
        if has_bn:
            in_specs.append(pl.BlockSpec((1, N_pad), lambda i: (0, 0)))
            args.append(scale.reshape(1, N_pad))
        out_specs = pl.BlockSpec((tm, N_pad), lambda i: (i, 0))
        grid = (nm,)
        scratch = []
        dims = ("parallel",)

    out_dtype = x.dtype
    bytes_accessed = int(x.size * x.dtype.itemsize
                         + w.size * w.dtype.itemsize
                         + (2 if has_bn else 1) * N_pad * 4
                         + M * N_pad * jnp.dtype(out_dtype).itemsize)
    cost = pl.CostEstimate(flops=2 * M * K * N_pad, transcendentals=0,
                           bytes_accessed=bytes_accessed)

    out = pl.pallas_call(
        functools.partial(_mfc_kernel, has_bn=has_bn, k_tiled=k_tiled),
        out_shape=jax.ShapeDtypeStruct((M, N_pad), out_dtype),
        grid=grid,
        in_specs=in_specs,
        out_specs=out_specs,
        scratch_shapes=scratch,
        compiler_params=pltpu.CompilerParams(dimension_semantics=dims),
        cost_estimate=cost,
    )(*args)

    return out[:, :N] if N_pad != N else out


# ---------------- MFC parameters (mirrors xavier_init_fc) ----------------
def init_mfc_params(key, fc_layers, have_bn=False, have_last_bn=False):
    params = {"fc_layers": tuple(fc_layers)}
    if len(fc_layers) > 1:
        in_f, out_f = fc_layers[0], fc_layers[1]
        r = math.sqrt(6.0) / math.sqrt(in_f + out_f)
        # torch stores Linear weight as (out, in); kernel uses (in, out) so the
        # output features land on the 128-lane axis.
        params["w"] = jax.random.uniform(key, (in_f, out_f), jnp.float32, -r, r)
        params["b"] = jnp.zeros((out_f,), jnp.float32)
        if have_bn and len(fc_layers) == 2 and have_last_bn:
            params["bn_gamma"] = jnp.ones((out_f,), jnp.float32)
            params["bn_beta"] = jnp.zeros((out_f,), jnp.float32)
            params["bn_mean"] = jnp.zeros((out_f,), jnp.float32)
            params["bn_var"] = jnp.ones((out_f,), jnp.float32)
    return params


# ---------------- forward pass ----------------
def mfc_forward(params, inputs, have_dp=True, have_bn=False, have_last_bn=False):
    n_fc = len(params["fc_layers"])
    if n_fc <= 1:
        # MFC with a single layer spec is the identity.
        return inputs
    if n_fc > 2:
        # Matches PyTorch: forward() never assigns `features` for n_fc > 2.
        raise ValueError("MFC.forward only supports n_fc <= 2 (as in the reference module)")

    bn_scale = bn_shift = None
    if have_bn and have_last_bn:
        eps = 1e-5
        inv_std = jax.lax.rsqrt(params["bn_var"] + eps)
        bn_scale = params["bn_gamma"] * inv_std
        bn_shift = params["bn_beta"] - params["bn_mean"] * bn_scale

    # have_dp: nn.Dropout is identity in eval mode.
    # TODO(synk): training-mode dropout (random mask + 1/(1-p) scaling) and
    #             BatchNorm batch-statistics update are not implemented.
    return pallas_mfc(inputs, params["w"], params["b"], bn_scale, bn_shift)


if __name__ == "__main__":
    key = jax.random.PRNGKey(0)
    pkey, xkey, k1, k2, k3, k4, xkey2 = jax.random.split(key, 7)

    # ---- 1) MFC(fc_layers=[64, 128], dropout=0.2, have_dp=True): no BN ----
    fc_layers = (64, 128)
    params = init_mfc_params(pkey, fc_layers)
    batch = 16
    inputs = jax.random.normal(xkey, (batch, fc_layers[0]), jnp.float32)

    out = mfc_forward(params, inputs, have_dp=True, have_bn=False, have_last_bn=False)
    jax.block_until_ready(out)
    assert out.shape == (batch, fc_layers[1])
    ref = inputs @ params["w"] + params["b"]
    assert jnp.max(jnp.abs(out - ref)) < 1e-4

    # ---- 2) same layer with eval-mode BatchNorm (non-trivial running stats) ----
    bn_params = init_mfc_params(pkey, fc_layers, have_bn=True, have_last_bn=True)
    out_f = fc_layers[1]
    bn_params["bn_gamma"] = 1.0 + 0.1 * jax.random.normal(k1, (out_f,), jnp.float32)
    bn_params["bn_beta"] = 0.05 * jax.random.normal(k2, (out_f,), jnp.float32)
    bn_params["bn_mean"] = 0.1 * jax.random.normal(k3, (out_f,), jnp.float32)
    bn_params["bn_var"] = 1.0 + 0.1 * jnp.abs(jax.random.normal(k4, (out_f,), jnp.float32))

    out_bn = mfc_forward(bn_params, inputs, have_dp=True, have_bn=True, have_last_bn=True)
    jax.block_until_ready(out_bn)
    eps = 1e-5
    lin = inputs @ bn_params["w"] + bn_params["b"]
    ref_bn = ((lin - bn_params["bn_mean"]) * jax.lax.rsqrt(bn_params["bn_var"] + eps)
              * bn_params["bn_gamma"] + bn_params["bn_beta"])
    assert jnp.max(jnp.abs(out_bn - ref_bn)) < 1e-3

    # ---- 3) ragged batch + K-tiled accumulation + padded (non-128) out_f ----
    fc_layers2 = (256, 192)
    params2 = init_mfc_params(pkey, fc_layers2)
    inputs2 = jax.random.normal(xkey2, (300, fc_layers2[0]), jnp.float32)
    out2 = mfc_forward(params2, inputs2)
    jax.block_until_ready(out2)
    assert out2.shape == (300, fc_layers2[1])
    ref2 = inputs2 @ params2["w"] + params2["b"]
    assert jnp.max(jnp.abs(out2 - ref2)) < 3e-2

    print("KERNEL_OK")
</pallas_src>

<mosaic_0001>
module attributes {stable_mosaic.version = 11 : i64} {
  func.func @_mfc_kernel(%arg0: i32, %arg1: memref<16x64xf32, #tpu.memory_space<vmem>>, %arg2: memref<64x128xf32, #tpu.memory_space<vmem>>, %arg3: memref<1x128xf32, #tpu.memory_space<vmem>>, %arg4: memref<16x128xf32, #tpu.memory_space<vmem>>) attributes {dimension_semantics = [#tpu.dimension_semantics<parallel>], iteration_bounds = array<i64: 1>, scalar_prefetch = 0 : i64, scratch_operands = 0 : i64, tpu.core_type = #tpu.core_type<tc>, window_params = [{transform_indices = @transform_0, window_bounds = array<i64: 16, 64>}, {pipeline_mode = #tpu.pipeline_mode<synchronous>, transform_indices = @transform_1, window_bounds = array<i64: 64, 128>}, {pipeline_mode = #tpu.pipeline_mode<synchronous>, transform_indices = @transform_2, window_bounds = array<i64: 1, 128>}, {transform_indices = @transform_3, window_bounds = array<i64: 16, 128>}]} {
    %c0 = arith.constant 0 : index
    %c0_0 = arith.constant 0 : index
    %0 = vector.load %arg1[%c0, %c0_0] : memref<16x64xf32, #tpu.memory_space<vmem>>, vector<16x64xf32>
    %c0_1 = arith.constant 0 : index
    %c0_2 = arith.constant 0 : index
    %1 = vector.load %arg2[%c0_1, %c0_2] : memref<64x128xf32, #tpu.memory_space<vmem>>, vector<64x128xf32>
    %cst = arith.constant dense<0.000000e+00> : vector<16x128xf32>
    %2 = tpu.matmul %0, %1, %cst {dimension_numbers = #tpu.dot_dimension_numbers<[1], [0], [0], [1], [0, 0, 1, 1], [], []>} : vector<16x64xf32>, vector<64x128xf32>, vector<16x128xf32> -> vector<16x128xf32>
    %c0_3 = arith.constant 0 : index
    %c0_4 = arith.constant 0 : index
    %3 = vector.load %arg3[%c0_3, %c0_4] : memref<1x128xf32, #tpu.memory_space<vmem>>, vector<1x128xf32>
    %4 = vector.broadcast %3 : vector<1x128xf32> to vector<16x128xf32>
    %5 = arith.addf %2, %4 : vector<16x128xf32>
    %c0_5 = arith.constant 0 : index
    %c0_6 = arith.constant 0 : index
    %6 = vector.load %arg4[%c0_5, %c0_6] : memref<16x128xf32, #tpu.memory_space<vmem>>, vector<16x128xf32>
    tpu.vector_store %arg4[%c0_5, %c0_6], %5 {strides = array<i32>} : memref<16x128xf32, #tpu.memory_space<vmem>>, vector<16x128xf32>,
    return
  }
  func.func @transform_0(%arg0: i32) -> (i32, i32) {
    %c0_i32 = arith.constant 0 : i32
    %c0_i32_0 = arith.constant 0 : i32
    return %arg0, %c0_i32 : i32, i32
  }
  func.func @transform_1(%arg0: i32) -> (i32, i32) {
    %c0_i32 = arith.constant 0 : i32
    %c0_i32_0 = arith.constant 0 : i32
    %c0_i32_1 = arith.constant 0 : i32
    return %c0_i32, %c0_i32_0 : i32, i32
  }
  func.func @transform_2(%arg0: i32) -> (i32, i32) {
    %c0_i32 = arith.constant 0 : i32
    %c0_i32_0 = arith.constant 0 : i32
    %c0_i32_1 = arith.constant 0 : i32
    return %c0_i32, %c0_i32_0 : i32, i32
  }
  func.func @transform_3(%arg0: i32) -> (i32, i32) {
    %c0_i32 = arith.constant 0 : i32
    %c0_i32_0 = arith.constant 0 : i32
    return %arg0, %c0_i32 : i32, i32
  }
}

</mosaic_0001>

<bundles_post_ra>
// kernel: tpu_custom_call.1
= control target key start
LH: loop header
LB: loop body
LE: loop exit
PB: predicated region body
PF: predicated region fallthrough
CT: control target
= control target key end

     0   :  { %8 = vsyncpa [#allocation3], 0  ;;  %s253_s0 = inlined_call_operand.hbm [shape: f32[16,64], index: 0, kind: input, shape index: {}]   ;;  %s254_s1 = inlined_call_operand.hbm [shape: f32[64,128], index: 1, kind: input, shape index: {}]   ;;  %s255_s2 = inlined_call_operand.vmem [shape: f32[1,128], index: 2, kind: input, shape index: {}]   ;;  %s256_s3 = inlined_call_operand.hbm [shape: f32[16,128], index: 3, kind: output, shape index: {}]  }
   0x1   :  { %9 = vsyncpa [#allocation6], 0 }
   0x2   :  { %10 = vsyncpa [#allocation4], 0  ;;  %s15_s14 = sshll.u32 %s253_s0, 4  ;;  %s207_s15 = smov [#allocation2]   ;;  %s16_s14 = int_to_ptr.hbm [resolvable:$true] %s15_s14 }
   0x3   :  { %s17_s16 = sshll.u32 %s207_s15, 4  ;;  %s28_s19 = sshll.u32 %s254_s1, 4  ;;  %s18_s16 = int_to_ptr.vmem [resolvable:$true] %s17_s16  ;;  %s29_s19 = int_to_ptr.hbm [resolvable:$true] %s28_s19 }
   0x4   :  { %s208_s20 = smov 128   ;;  %s209_s21 = smov 8  }
   0x5   :  { %23 = dma.hbm_to_vmem [thread:$0]  %s16_s14, 256, %s18_s16, [#allocation3], %s208_s20, %s208_s20, %s209_s21  }
   0x6   :  { %s210_s22 = smov [#allocation5]  }
   0x7   :  { %s30_s23 = sshll.u32 %s210_s22, 4  ;;  %s31_s23 = int_to_ptr.vmem [resolvable:$true] %s30_s23 }
   0x8   :  { %36 = dma.hbm_to_vmem [thread:$0]  %s29_s19, 1024, %s31_s23, [#allocation6], %s208_s20, %s208_s20, %s209_s21  }
   0x9   :  { %201 = dma.done.wait [#allocation3], 256  }
   0xa   :  { %202 = vsyncadd [#allocation3], 4294967040 }
   0xb   :  { %203 = dma.done.wait [#allocation6], 1024  }
   0xc   :  { %204 = vsyncadd [#allocation6], 4294966272  ;;  %v56_v0 = vld [vmem:[#allocation5 + $0x38] sm:$0xff]  ;;  %v55_v1 = vld [vmem:[#allocation5 + $0x30] sm:$0xff]  ;;  %vm61_vm0 = vcmask 523264   ;;  %s211_s24 = smov [#allocation7]  }
   0xd   :  { %76 = vmatpush.msra.mxu0 %v56_v0  ;;  %115 = vmatpush.msra.mxu1 %v56_v0  ;;  %v54_v2 = vld [vmem:[#allocation5 + $0x28] sm:$0xff]  ;;  %v53_v3 = vld [vmem:[#allocation5 + $0x20] sm:$0xff]  ;;  %v52_v4 = vld [vmem:[#allocation5 + $0x18] sm:$0xff]  ;;  %s97_s25 = sshll.u32 %s211_s24, 4  ;;  %s99_s28 = sshll.u32 %s256_s3, 4  ;;  %s98_s25 = int_to_ptr.vmem [resolvable:$true] %s97_s25  ;;  %s100_s28 = int_to_ptr.hbm [resolvable:$true] %s99_s28 }
   0xe   :  { %v51_v5 = vld [vmem:[#allocation5 + $0x10] sm:$0xff]  ;;  %v50_v6 = vld [vmem:[#allocation5 + $0x8] sm:$0xff]  ;;  %v49_v7 = vld [vmem:[#allocation5] sm:$0xff] }
   0xf   :  { %77 = vmatpush.msra.mxu0 %v55_v1  ;;  %116 = vmatpush.msra.mxu1 %v55_v1  ;;  %v47_v8 = vld [vmem:[#allocation2] sm:$0xff]  ;;  %v48_v9 = vld [vmem:[#allocation2 + $0x8] sm:$0xff] }
  0x10   :  { %v128_v10 = vld [vmem:[%s255_s2] ss:$0 sm:$0xff] }
  0x11   :  { %78 = vmatpush.msra.mxu0 %v54_v2  ;;  %117 = vmatpush.msra.mxu1 %v54_v2 }
  0x13   :  { %79 = vmatpush.msra.mxu0 %v53_v3  ;;  %118 = vmatpush.msra.mxu1 %v53_v3 }
  0x15   :  { %80 = vmatpush.msra.mxu0 %v52_v4  ;;  %119 = vmatpush.msra.mxu1 %v52_v4 }
  0x17   :  { %81 = vmatpush.msra.mxu0 %v51_v5  ;;  %120 = vmatpush.msra.mxu1 %v51_v5 }
  0x19   :  { %82 = vmatpush.msra.mxu0 %v50_v6  ;;  %121 = vmatpush.msra.mxu1 %v50_v6 }
  0x1b   :  { %83 = vmatpush.msra.mxu0 %v49_v7  ;;  %122 = vmatpush.msra.mxu1 %v49_v7 }
  0x1c   :  { %113 = vmatmul.msk.f32.vlgmr.msra.gmra.mxu0 %vm61_vm0, %v47_v8  ;;  %114 = vmatmul.msk.f32.vlgmr.msra.gmra.mxu1 %vm61_vm0, %v48_v9 }
  0x99   :  { %v85_v11 = vpop.f32.mrf.mxu0  ;;  %v88_v12 = vpop.f32.mrf.mxu1 }
  0x9a   :  { %v86_v13 = vadd.f32 %v128_v10, %v85_v11  ;;  %v89_v14 = vadd.f32 %v128_v10, %v88_v12 }
  0x9c   :  { %91 = vst [vmem:[#allocation7] sm:$0xff] %v86_v13 }
  0x9d   :  { %92 = vst [vmem:[#allocation7 + $0x8] sm:$0xff] %v89_v14 }
  0x9e   :  { %105 = dma.vmem_to_hbm [thread:$0]  %s98_s25, 256, %s100_s28, [#allocation4], %s208_s20, %s208_s20, %s209_s21  }
  0x9f   :  { %205 = dma.done.wait [#allocation4], 256  }
  0xa0   :  { %206 = vsyncadd [#allocation4], 4294967040 }
  0xa1   :  { %110 = vsyncpa [#allocation3], 1 }
  0xa2   :  { %111 = vsyncpa [#allocation6], 1 }
  0xa3   :  { %112 = vsyncpa [#allocation4], 1 }

</bundles_post_ra>
